<compile_context>
chip_gen: v5e
topology: v5e:2x2
jax: 0.10.0
libtpu: 0.0.40
codegen_flags: <defaults>
</compile_context>

<pallas_src>
import jax
import jax.numpy as jnp
from jax.experimental import pallas as pl
from jax.experimental.pallas import tpu as pltpu


def _logreg_kernel(x_ref, w_ref, b_ref, y_ref):
    # x_ref: (tm, D) contiguous row block of inputs (VMEM)
    # w_ref: (D, 1)  weights, resident in VMEM across all grid steps
    # b_ref: (1,)    bias scalar in SMEM
    # y_ref: (tm, 1) output block
    z = jnp.dot(
        x_ref[...],
        w_ref[...],
        preferred_element_type=jnp.float32,
        precision=jax.lax.Precision.HIGHEST,
    )                                                # MXU, f32-accurate
    z = z + b_ref[0]                                 # scalar broadcast add
    # exact sigmoid: exp goes to the EUP; the f32 divide stays on the VALU.
    y_ref[...] = (1.0 / (1.0 + jnp.exp(-z))).astype(y_ref.dtype)


def _vmem_limit_bytes():
    """Generation-aware scoped-VMEM request (leave headroom for Mosaic)."""
    try:
        cap = pltpu.get_tpu_info().vmem_capacity_bytes
    except Exception:
        cap = 64 * 1024 * 1024  # conservative (v7x-sized) fallback
    # ~3/4 of physical VMEM: ~48 MiB on v7x (64 MiB), ~96 MiB on v5e/v6e (128 MiB).
    return int(min(cap * 3 // 4, 96 * 1024 * 1024))


def _choose_row_tile(N, D, vmem_limit):
    """Pick a batch (sublane) tile for contiguous (tm, D) row blocks."""
    bytes_per_row = D * 4
    # x block is double-buffered; keep it to ~half the scoped-VMEM budget so
    # the output buffers, weights and internal scratch have room.
    max_by_vmem = max(8, (vmem_limit // 2) // (2 * bytes_per_row))
    # At least 2 grid steps so the "parallel" axis can shard across v7x's two
    # TensorCores and the pipeline actually overlaps DMA with compute.
    target = max(8, -(-N // 2))  # ceil(N / 2)
    tm = min(4096, max_by_vmem, target)
    if tm >= 128:
        tm = (tm // 128) * 128   # lane/DMA friendly granularity
    else:
        tm = max(8, (tm // 8) * 8)  # sublane granularity for small batches
    return tm


def logistic_regression_forward(x, w, b, *, tm=None):
    """x: (N, D) f32, w: (D, 1) f32, b: (1,) f32 -> (N, 1) f32."""
    N, D = x.shape
    assert w.shape == (D, 1)
    x = x.astype(jnp.float32)
    w = w.astype(jnp.float32)
    b = jnp.reshape(b, (1,)).astype(jnp.float32)

    vmem_limit = _vmem_limit_bytes()
    if tm is None:
        tm = _choose_row_tile(N, D, vmem_limit)

    # Pad the batch to a tile multiple (cheap, contiguous); padded rows are
    # computed and discarded, never fall back to a single whole-batch block.
    n_blocks = -(-N // tm)
    N_pad = n_blocks * tm
    if N_pad != N:
        x = jnp.pad(x, ((0, N_pad - N), (0, 0)))

    y = pl.pallas_call(
        _logreg_kernel,
        out_shape=jax.ShapeDtypeStruct((N_pad, 1), jnp.float32),
        grid_spec=pltpu.PrefetchScalarGridSpec(
            num_scalar_prefetch=0,
            grid=(n_blocks,),
            in_specs=[
                # contiguous (tm, D) row block of x
                pl.BlockSpec((tm, D), lambda i: (i, 0)),
                # full weights, resident across the grid
                pl.BlockSpec((D, 1), lambda i: (0, 0)),
                # bias scalar on the scalar path
                pl.BlockSpec(memory_space=pltpu.MemorySpace.SMEM),
            ],
            out_specs=pl.BlockSpec((tm, 1), lambda i: (i, 0)),
        ),
        compiler_params=pltpu.CompilerParams(
            dimension_semantics=("parallel",),   # megacore-shardable on v7x
            vmem_limit_bytes=vmem_limit,
        ),
    )(x, w, b)

    return y[:N]


# TODO(synk): binary_cross_entropy is a separate loss method, not part of
# forward(); it is intentionally not implemented as a Pallas kernel here.


if __name__ == "__main__":
    key = jax.random.PRNGKey(0)
    k_x, k_w, k_b = jax.random.split(key, 3)

    N, D = 128, 32  # small shapes: 128 samples, input_dim=32
    x = jax.random.normal(k_x, (N, D), dtype=jnp.float32)
    # Parameters match torch.randn(input_dim, 1) and torch.randn(1)
    w = jax.random.normal(k_w, (D, 1), dtype=jnp.float32)
    b = jax.random.normal(k_b, (1,), dtype=jnp.float32)

    y = logistic_regression_forward(x, w, b)
    y = jax.block_until_ready(y)

    # reference check (plain JAX)
    y_ref = jax.nn.sigmoid(x @ w + b[0])
    assert y.shape == (N, 1)
    assert jnp.allclose(y, y_ref, atol=1e-5, rtol=1e-5)

    print("KERNEL_OK")
</pallas_src>

<mosaic_0001>
module attributes {stable_mosaic.version = 11 : i64} {
  func.func @_logreg_kernel(%arg0: i32, %arg1: memref<64x32xf32, #tpu.memory_space<vmem>>, %arg2: memref<32x1xf32, #tpu.memory_space<vmem>>, %arg3: memref<1xf32, #tpu.memory_space<smem>>, %arg4: memref<64x1xf32, #tpu.memory_space<vmem>>) attributes {dimension_semantics = [#tpu.dimension_semantics<parallel>], iteration_bounds = array<i64: 2>, scalar_prefetch = 0 : i64, scratch_operands = 0 : i64, tpu.core_type = #tpu.core_type<tc>, window_params = [{transform_indices = @transform_0, window_bounds = array<i64: 64, 32>}, {pipeline_mode = #tpu.pipeline_mode<synchronous>, transform_indices = @transform_1, window_bounds = array<i64: 32, 1>}, {transform_indices = @transform_2, window_bounds = array<i64: 1>}, {transform_indices = @transform_3, window_bounds = array<i64: 64, 1>}]} {
    %c0 = arith.constant 0 : index
    %c0_0 = arith.constant 0 : index
    %0 = vector.load %arg1[%c0, %c0_0] : memref<64x32xf32, #tpu.memory_space<vmem>>, vector<64x32xf32>
    %c0_1 = arith.constant 0 : index
    %c0_2 = arith.constant 0 : index
    %1 = vector.load %arg2[%c0_1, %c0_2] : memref<32x1xf32, #tpu.memory_space<vmem>>, vector<32x1xf32>
    %cst = arith.constant dense<0.000000e+00> : vector<64x1xf32>
    %2 = tpu.matmul %0, %1, %cst {dimension_numbers = #tpu.dot_dimension_numbers<[1], [0], [0], [1], [0, 0, 1, 1], [], []>, precision = #tpu.contract_precision<fp32>} : vector<64x32xf32>, vector<32x1xf32>, vector<64x1xf32> -> vector<64x1xf32>
    %c0_3 = arith.constant 0 : index
    %3 = memref.load %arg3[%c0_3] : memref<1xf32, #tpu.memory_space<smem>>
    %4 = vector.broadcast %3 : f32 to vector<64x1xf32>
    %5 = arith.addf %2, %4 : vector<64x1xf32>
    %cst_4 = arith.constant 0.000000e+00 : f32
    %6 = vector.broadcast %cst_4 : f32 to vector<64x1xf32>
    %7 = arith.subf %6, %5 : vector<64x1xf32>
    %8 = math.exp %7 : vector<64x1xf32>
    %cst_5 = arith.constant 1.000000e+00 : f32
    %9 = vector.broadcast %cst_5 : f32 to vector<64x1xf32>
    %10 = arith.addf %9, %8 : vector<64x1xf32>
    %cst_6 = arith.constant 1.000000e+00 : f32
    %11 = vector.broadcast %cst_6 : f32 to vector<64x1xf32>
    %12 = arith.divf %11, %10 : vector<64x1xf32>
    %c0_7 = arith.constant 0 : index
    %c0_8 = arith.constant 0 : index
    %13 = vector.load %arg4[%c0_7, %c0_8] : memref<64x1xf32, #tpu.memory_space<vmem>>, vector<64x1xf32>
    tpu.vector_store %arg4[%c0_7, %c0_8], %12 {strides = array<i32>} : memref<64x1xf32, #tpu.memory_space<vmem>>, vector<64x1xf32>,
    return
  }
  func.func @transform_0(%arg0: i32) -> (i32, i32) {
    %c0_i32 = arith.constant 0 : i32
    %c0_i32_0 = arith.constant 0 : i32
    return %arg0, %c0_i32 : i32, i32
  }
  func.func @transform_1(%arg0: i32) -> (i32, i32) {
    %c0_i32 = arith.constant 0 : i32
    %c0_i32_0 = arith.constant 0 : i32
    %c0_i32_1 = arith.constant 0 : i32
    return %c0_i32, %c0_i32_0 : i32, i32
  }
  func.func @transform_2(%arg0: i32) -> i32 {
    %c0_i32 = arith.constant 0 : i32
    %c0_i32_0 = arith.constant 0 : i32
    return %c0_i32 : i32
  }
  func.func @transform_3(%arg0: i32) -> (i32, i32) {
    %c0_i32 = arith.constant 0 : i32
    %c0_i32_0 = arith.constant 0 : i32
    return %arg0, %c0_i32 : i32, i32
  }
}

</mosaic_0001>

<bundles_post_ra>
// kernel: tpu_custom_call.1
= control target key start
LH: loop header
LB: loop body
LE: loop exit
PB: predicated region body
PF: predicated region fallthrough
CT: control target
= control target key end

     0   :  { %s923_s14 = smov 0   ;;  %s1142_s0 = inlined_call_operand.vmem [shape: f32[128,32], index: 0, kind: input, shape index: {}]   ;;  %s1143_s1 = inlined_call_operand.vmem [shape: f32[32,1], index: 1, kind: input, shape index: {}]   ;;  %s1144_s2 = inlined_call_operand.<no memory space> [shape: f32[1], index: 2, kind: input, shape index: {}]   ;;  %s1145_s3 = inlined_call_operand.vmem [shape: f32[128,1], index: 3, kind: output, shape index: {}]  }
   0x1   :  { %8 = sst [smem:[#allocation2]] %s1144_s2 }
   0x2 LB: > { %s833_s15 = sadd.s32 4294967295, %s898_s14   ;;  %p837_p0 = scmp.ge.s32.totalorder %s898_s14, 1  ;;  %s898_s14 = sphi %s923_s14, %s14_s14  }
   0x3   : > { %p139_p1 = scmp.lt.s32.totalorder %s898_s14, 3 }
   0x5   : > { %p140_p2 = pnand %p837_p0, %p139_p1 }
   0x6   : > { %s838_s21 = sshll.u32 (!%p140_p2), %s833_s15, 3  ;;  %s187_s28 = sld [smem:[#allocation2]] (!%p140_p2) }
   0x7   : > { %143 = sbr.rel (%p140_p2) target bundleno = 291 (0x123), region = 32  ;;  %p164_p3 = scmp.lt.s32.totalorder (!%p140_p2), %s838_s21, 15 }
   0xc   : > { %v186_v0 = vld [vmem:[%s1143_s1 + $0x18] sm:$0xff]  ;;  %v185_v1 = vld [vmem:[%s1143_s1 + $0x10] sm:$0xff]  ;;  %v184_v2 = vld [vmem:[%s1143_s1 + $0x8] sm:$0xff]  ;;  %s1147_s21 = smov (!%p164_p3, %s838_s21), 15  ;;  %vm189_vm0 = vcmask 261120   ;;  %vm768_vm4 = vcmask 7168  }
   0xd   : > { %v940_v3 = vand.u32 4294901760, %v186_v0  ;;  %v942_v4 = vand.u32 4294901760, %v185_v1  ;;  %v944_v5 = vand.u32 4294901760, %v184_v2  ;;  %v183_v6 = vld [vmem:[%s1143_s1] sm:$0xff]  ;;  %s839_s24 = sshll.u32 %s1147_s21, 3 }
   0xe   : > { %v949_v7 = vand.u32 4294901760, %v183_v6  ;;  %s969_s27 = scalar_lea.vmem %s1142_s0, %s839_s24  ;;  %s1107_s4 = scalar_lea.vmem %s1145_s3, %s839_s24 }
   0xf   : > { %844 = vmatpush.msra.mxu2 %v940_v3  ;;  %v312_v8 = vsub.f32 %v186_v0, %v940_v3  ;;  %v318_v9 = vsub.f32 %v185_v1, %v942_v4  ;;  %v324_v10 = vsub.f32 %v184_v2, %v944_v5  ;;  %227 = vmatpush.msra.mxu0 %v940_v3  ;;  %v179_v19 = vld [vmem:[%s969_s27 + $0x20] sm:$0xff]  ;;  %v180_v20 = vld [vmem:[%s969_s27 + $0x28] sm:$0xff]  ;;  %v181_v30 = vld [vmem:[%s969_s27 + $0x30] sm:$0xff] }
  0x10   : > { %v959_v11 = vsub.f32 %v183_v6, %v949_v7  ;;  %v175_v21 = vld [vmem:[%s969_s27] sm:$0xff]  ;;  %v203_v22 = vsel %vm189_vm0, %v179_v19, 0  ;;  %v206_v23 = vsel %vm189_vm0, %v180_v20, 0  ;;  %v176_v25 = vld [vmem:[%s969_s27 + $0x8] sm:$0xff]  ;;  %v177_v33 = vld [vmem:[%s969_s27 + $0x10] sm:$0xff]  ;;  %v209_v39 = vsel %vm189_vm0, %v181_v30, 0 }
  0x11   : > { %845 = vmatpush.msra.mxu2 %v942_v4  ;;  %v313_v12 = vand.u32 4294901760, %v312_v8  ;;  %v319_v13 = vand.u32 4294901760, %v318_v9  ;;  %v325_v14 = vand.u32 4294901760, %v324_v10  ;;  %229 = vmatpush.msra.mxu0 %v942_v4  ;;  %v191_v24 = vsel %vm189_vm0, %v175_v21, 0  ;;  %v182_v53 = vld [vmem:[%s969_s27 + $0x38] sm:$0xff] }
  0x12   : > { %v331_v15 = vand.u32 4294901760, %v959_v11  ;;  %v982_v28 = vand.u32 4294901760, %v203_v22  ;;  %v987_v31 = vand.u32 4294901760, %v206_v23  ;;  %v989_v32 = vand.u32 4294901760, %v191_v24  ;;  %v178_v55 = vld [vmem:[%s969_s27 + $0x18] sm:$0xff] }
  0x13   : > { %v314_v16 = vsub.f32 %v312_v8, %v313_v12  ;;  %846 = vmatpush.msra.mxu2 %v944_v5  ;;  %v320_v17 = vsub.f32 %v318_v9, %v319_v13  ;;  %v326_v18 = vsub.f32 %v324_v10, %v325_v14  ;;  %231 = vmatpush.msra.mxu0 %v944_v5  ;;  %v194_v36 = vsel %vm189_vm0, %v176_v25, 0 }
  0x14   : > { %v332_v29 = vsub.f32 %v959_v11, %v331_v15  ;;  %v993_v35 = vsub.f32 %v203_v22, %v982_v28  ;;  %v997_v37 = vsub.f32 %v206_v23, %v987_v31  ;;  %v1000_v38 = vsub.f32 %v191_v24, %v989_v32 }
  0x15   : > { %v315_v26 = vand.u32 4294901760, %v314_v16  ;;  %v321_v27 = vand.u32 4294901760, %v320_v17  ;;  %847 = vmatpush.msra.mxu2 %v949_v7  ;;  %233 = vmatpush.msra.mxu0 %v949_v7  ;;  %v327_v34 = vand.u32 4294901760, %v326_v18  ;;  %v1003_v40 = vand.u32 4294901760, %v194_v36 }
  0x16   : > { %v268_v41 = vand.u32 4294901760, %v993_v35  ;;  %v333_v42 = vand.u32 4294901760, %v332_v29  ;;  %v197_v43 = vsel %vm189_vm0, %v177_v33, 0  ;;  %v236_v44 = vand.u32 4294901760, %v1000_v38 }
  0x17   : > { %382 = vmatpush.msrb.mxu2 %v312_v8  ;;  %517 = vmatpush.msrb.mxu0 %v313_v12  ;;  %v1009_v45 = vsub.f32 %v194_v36, %v1003_v40  ;;  %v276_v47 = vand.u32 4294901760, %v997_v37  ;;  %v1015_v48 = vand.u32 4294901760, %v209_v39  ;;  %v1022_v51 = vand.u32 4294901760, %v197_v43 }
  0x18   : > { %848 = vmatpush.msra.mxu3 %v315_v26  ;;  %316 = vmatpush.msra.mxu1 %v315_v26  ;;  %v269_v46 = vsub.f32 %v993_v35, %v268_v41  ;;  %v237_v49 = vsub.f32 %v1000_v38, %v236_v44  ;;  %v212_v59 = vsel %vm189_vm0, %v182_v53, 0  ;;  %v200_v61 = vsel %vm189_vm0, %v178_v55, 0 }
  0x19   : > { %385 = vmatpush.msrb.mxu2 %v318_v9  ;;  %521 = vmatpush.msrb.mxu0 %v319_v13  ;;  %v244_v50 = vand.u32 4294901760, %v1009_v45  ;;  %v277_v56 = vsub.f32 %v997_v37, %v276_v47  ;;  %v1033_v57 = vsub.f32 %v209_v39, %v1015_v48  ;;  %v251_v60 = vsub.f32 %v197_v43, %v1022_v51 }
  0x1a   : > { %849 = vmatpush.msra.mxu3 %v321_v27  ;;  %322 = vmatpush.msra.mxu1 %v321_v27  ;;  %v270_v52 = vand.u32 4294901760, %v269_v46  ;;  %v238_v54 = vand.u32 4294901760, %v237_v49  ;;  %v290_v0 = vand.u32 4294901760, %v212_v59  ;;  %v1091_v33 = vstv %s187_s28 }
  0x1b   : > { %388 = vmatpush.msrb.mxu2 %v324_v10  ;;  %525 = vmatpush.msrb.mxu0 %v325_v14  ;;  %v245_v58 = vsub.f32 %v1009_v45, %v244_v50  ;;  %v278_v62 = vand.u32 4294901760, %v277_v56  ;;  %v284_v63 = vand.u32 4294901760, %v1033_v57  ;;  %v252_v2 = vand.u32 4294901760, %v251_v60 }
  0x1c   : > { %850 = vmatpush.msra.mxu3 %v327_v34  ;;  %328 = vmatpush.msra.mxu1 %v327_v34  ;;  %v291_v6 = vsub.f32 %v212_v59, %v290_v0 }
  0x1d   : > { %391 = vmatpush.msrb.mxu2 %v959_v11  ;;  %529 = vmatpush.msrb.mxu0 %v331_v15  ;;  %v246_v1 = vand.u32 4294901760, %v245_v58  ;;  %v253_v8 = vsub.f32 %v251_v60, %v252_v2 }
  0x1e   : > { %851 = vmatpush.msra.mxu3 %v333_v42  ;;  %334 = vmatpush.msra.mxu1 %v333_v42  ;;  %v292_v11 = vand.u32 4294901760, %v291_v6 }
  0x1f   : > { %352 = vmatmul.f32.vlgmr.msra.gmra.mxu3 %v982_v28  ;;  %336 = vmatmul.f32.vlgmr.msra.gmra.mxu1 %v989_v32  ;;  %v254_v12 = vand.u32 4294901760, %v253_v8 }
  0x20   : > { %271 = vmatmul.f32.vlgmr.msra.gmra.mxu2 %v270_v52  ;;  %446 = vmatpush.msrb.mxu3 %v940_v3  ;;  %v293_v13 = vsub.f32 %v291_v6, %v292_v11 }
  0x21   : > { %239 = vmatmul.f32.vlgmr.msra.gmra.mxu0 %v238_v54  ;;  %576 = vmatpush.msrb.mxu1 %v940_v3  ;;  %v258_v3 = vand.u32 4294901760, %v200_v61 }
  0x22   : > { %448 = vmatpush.msrb.mxu3 %v942_v4  ;;  %v294_v15 = vand.u32 4294901760, %v293_v13 }
  0x23   : > { %578 = vmatpush.msrb.mxu1 %v942_v4  ;;  %v285_v4 = vsub.f32 %v1033_v57, %v284_v63  ;;  %v259_v9 = vsub.f32 %v200_v61, %v258_v3 }
  0x24   : > { %450 = vmatpush.msrb.mxu3 %v944_v5 }
  0x25   : > { %580 = vmatpush.msrb.mxu1 %v944_v5  ;;  %v286_v10 = vand.u32 4294901760, %v285_v4  ;;  %v260_v5 = vand.u32 4294901760, %v259_v9 }
  0x26   : > { %452 = vmatpush.msrb.mxu3 %v949_v7 }
  0x27   : > { %356 = vmatmul.f32.gmra.mxu3 %v987_v31  ;;  %340 = vmatmul.f32.gmra.mxu1 %v1003_v40  ;;  %v261_v14 = vsub.f32 %v259_v9, %v260_v5 }
  0x28   : > { %279 = vmatmul.f32.gmra.mxu2 %v278_v62  ;;  %582 = vmatpush.msrb.mxu1 %v949_v7 }
  0x29   : > { %247 = vmatmul.f32.gmra.mxu0 %v246_v1  ;;  %v262_v16 = vand.u32 4294901760, %v261_v14 }
  0x2f   : > { %360 = vmatmul.f32.gmra.mxu3 %v1015_v48  ;;  %344 = vmatmul.f32.gmra.mxu1 %v1022_v51 }
  0x30   : > { %287 = vmatmul.f32.gmra.mxu2 %v286_v10 }
  0x31   : > { %255 = vmatmul.f32.gmra.mxu0 %v254_v12 }
  0x37   : > { %364 = vmatmul.f32.gmra.mxu3 %v290_v0  ;;  %348 = vmatmul.f32.gmra.mxu1 %v258_v3 }
  0x38   : > { %295 = vmatmul.f32.gmra.mxu2 %v294_v15 }
  0x39   : > { %263 = vmatmul.f32.gmra.mxu0 %v262_v16 }
  0x3f   : > { %456 = vmatmul.f32.vlgmr.msrb.gmra.mxu3 %v236_v44  ;;  %584 = vmatmul.f32.vlgmr.msrb.gmra.mxu1 %v989_v32 }
  0x40   : > { %394 = vmatmul.f32.vlgmr.msrb.gmra.mxu2 %v1000_v38 }
  0x41   : > { %531 = vmatmul.f32.vlgmr.msrb.gmra.mxu0 %v989_v32 }
  0x47   : > { %462 = vmatmul.f32.gmra.mxu3 %v244_v50  ;;  %588 = vmatmul.f32.gmra.mxu1 %v1003_v40 }
  0x48   : > { %399 = vmatmul.f32.gmra.mxu2 %v1009_v45 }
  0x49   : > { %535 = vmatmul.f32.gmra.mxu0 %v1003_v40 }
  0x4f   : > { %468 = vmatmul.f32.gmra.mxu3 %v252_v2  ;;  %592 = vmatmul.f32.gmra.mxu1 %v1022_v51 }
  0x50   : > { %404 = vmatmul.f32.gmra.mxu2 %v251_v60 }
  0x51   : > { %539 = vmatmul.f32.gmra.mxu0 %v1022_v51 }
  0x57   : > { %474 = vmatmul.f32.gmra.mxu3 %v260_v5  ;;  %596 = vmatmul.f32.gmra.mxu1 %v258_v3 }
  0x58   : > { %409 = vmatmul.f32.gmra.mxu2 %v259_v9 }
  0x59   : > { %543 = vmatmul.f32.gmra.mxu0 %v258_v3 }
  0x5f   : > { %480 = vmatmul.f32.gmra.mxu3 %v268_v41  ;;  %600 = vmatmul.f32.gmra.mxu1 %v982_v28 }
  0x60   : > { %414 = vmatmul.f32.gmra.mxu2 %v993_v35 }
  0x61   : > { %547 = vmatmul.f32.gmra.mxu0 %v982_v28 }
  0x67   : > { %486 = vmatmul.f32.gmra.mxu3 %v276_v47  ;;  %604 = vmatmul.f32.gmra.mxu1 %v987_v31 }
  0x68   : > { %419 = vmatmul.f32.gmra.mxu2 %v997_v37 }
  0x69   : > { %551 = vmatmul.f32.gmra.mxu0 %v987_v31 }
  0x6f   : > { %492 = vmatmul.f32.gmra.mxu3 %v284_v63  ;;  %608 = vmatmul.f32.gmra.mxu1 %v1015_v48 }
  0x70   : > { %424 = vmatmul.f32.gmra.mxu2 %v1033_v57 }
  0x71   : > { %555 = vmatmul.f32.gmra.mxu0 %v1015_v48 }
  0x77   : > { %498 = vmatmul.f32.gmra.mxu3 %v292_v11  ;;  %612 = vmatmul.f32.gmra.mxu1 %v290_v0 }
  0x78   : > { %429 = vmatmul.f32.gmra.mxu2 %v291_v6 }
  0x79   : > { %559 = vmatmul.f32.gmra.mxu0 %v290_v0 }
  0x9c   : > { %v337_v7 = vpop.f32.mrf.mxu1 }
  0x9e   : > { %v240_v17 = vpop.f32.mrf.mxu0 }
  0x9f   : > { %v241_v34 = vadd.f32 %v240_v17, %v1091_v33 }
  0xa1   : > { %v338_v36 = vadd.f32 %v337_v7, %v241_v34 }
  0xa2   : > { %v1075_v18 = vpop.f32.mrf.mxu3 }
  0xa3   : > { %v1077_v19 = vpop.f32.mrf.mxu2 }
  0xa4   : > { %v341_v20 = vpop.f32.mrf.mxu1  ;;  %v273_v15 = vadd.f32 %v1077_v19, %v1091_v33 }
  0xa6   : > { %v248_v21 = vpop.f32.mrf.mxu0 }
  0xa7   : > { %v249_v41 = vadd.f32 %v248_v21, %v1091_v33 }
  0xa9   : > { %v342_v45 = vadd.f32 %v341_v20, %v249_v41 }
  0xaa   : > { %v1079_v22 = vpop.f32.mrf.mxu3 }
  0xab   : > { %v1081_v23 = vpop.f32.mrf.mxu2 }
  0xac   : > { %v345_v24 = vpop.f32.mrf.mxu1  ;;  %v281_v41 = vadd.f32 %v1081_v23, %v1091_v33 }
  0xae   : > { %v256_v25 = vpop.f32.mrf.mxu0 }
  0xaf   : > { %v257_v52 = vadd.f32 %v256_v25, %v1091_v33 }
  0xb1   : > { %v346_v57 = vadd.f32 %v345_v24, %v257_v52 }
  0xb2   : > { %v1083_v26 = vpop.f32.mrf.mxu3 }
  0xb3   : > { %v1085_v27 = vpop.f32.mrf.mxu2 }
  0xb4   : > { %v349_v28 = vpop.f32.mrf.mxu1 }
  0xb6   : > { %v264_v29 = vpop.f32.mrf.mxu0 }
  0xb7   : > { %v265_v0 = vadd.f32 %v264_v29, %v1091_v33 }
  0xb9   : > { %v350_v9 = vadd.f32 %v349_v28, %v265_v0  ;;  %v354_v28 = vadd.f32 %v1075_v18, %v273_v15 }
  0xba   : > { %v1087_v30 = vpop.f32.mrf.mxu3 }
  0xbb   : > { %v1089_v31 = vpop.f32.mrf.mxu2 }
  0xbc   : > { %v585_v32 = vpop.f32.mrf.mxu1 }
  0xbe   : > { %v532_v35 = vpop.f32.mrf.mxu0 }
  0xc2   : > { %v457_v37 = vpop.f32.mrf.mxu3 }
  0xc3   : > { %v395_v38 = vpop.f32.mrf.mxu2 }
  0xc4   : > { %v396_v39 = vadd.f32 %v395_v38, %v338_v36  ;;  %v589_v40 = vpop.f32.mrf.mxu1 }
  0xc6   : > { %v458_v42 = vadd.f32 %v457_v37, %v396_v39  ;;  %v536_v43 = vpop.f32.mrf.mxu0 }
  0xc8   : > { %v533_v44 = vadd.f32 %v532_v35, %v458_v42 }
  0xca   : > { %v586_v46 = vadd.f32 %v585_v32, %v533_v44  ;;  %v463_v47 = vpop.f32.mrf.mxu3 }
  0xcb   : > { %v400_v48 = vpop.f32.mrf.mxu2 }
  0xcc   : > { %v616_v49 = vsub.f32 0.0, %v586_v46  ;;  %v401_v50 = vadd.f32 %v400_v48, %v342_v45  ;;  %v593_v51 = vpop.f32.mrf.mxu1 }
  0xce   : > { %v624_v53 = vmul.f32 1.442695, %v616_v49  ;;  %v464_v54 = vadd.f32 %v463_v47, %v401_v50  ;;  %v540_v55 = vpop.f32.mrf.mxu0 }
  0xd0   : > { %860 = vpow2.f32 %v624_v53  ;;  %v537_v56 = vadd.f32 %v536_v43, %v464_v54 }
  0xd2   : > { %v590_v58 = vadd.f32 %v589_v40, %v537_v56  ;;  %v469_v59 = vpop.f32.mrf.mxu3 }
  0xd3   : > { %v405_v60 = vpop.f32.mrf.mxu2 }
  0xd4   : > { %v617_v61 = vsub.f32 0.0, %v590_v58  ;;  %v406_v62 = vadd.f32 %v405_v60, %v346_v57  ;;  %v597_v6 = vpop.f32.mrf.mxu1 }
  0xd6   : > { %v861_v63 = vpop.eup %860  ;;  %v626_v1 = vmul.f32 1.442695, %v617_v61  ;;  %v470_v2 = vadd.f32 %v469_v59, %v406_v62  ;;  %v544_v3 = vpop.f32.mrf.mxu0  ;;  %v289_v62 = vadd.f32 %v1085_v27, %v1091_v33 }
  0xd7   : > { %v640_v4 = vadd.f32 1.0, %v861_v63 }
  0xd8   : > { %862 = vpow2.f32 %v626_v1  ;;  %v541_v8 = vadd.f32 %v540_v55, %v470_v2 }
  0xd9   : > { %864 = vrcp.f32 %v640_v4  ;;  %v657_v36 = vand.u32 2147483647, %v640_v4  ;;  %v659_v37 = vand.u32 2147483648, %v640_v4  ;;  %vm653_vm2 = vweird.f32 %v640_v4 }
  0xda   : > { %v594_v10 = vadd.f32 %v593_v51, %v541_v8  ;;  %v475_v11 = vpop.f32.mrf.mxu3  ;;  %v358_v51 = vadd.f32 %v1079_v22, %v281_v41 }
  0xdb   : > { %v410_v12 = vpop.f32.mrf.mxu2  ;;  %v660_v46 = vor.u32 1.1754944e-38, %v659_v37  ;;  %vm658_vm5 = vcmp.eq.f32.partialorder %v657_v36, 8.507059e+37 }
  0xdc   : > { %v618_v5 = vsub.f32 0.0, %v594_v10  ;;  %v411_v13 = vadd.f32 %v410_v12, %v350_v9  ;;  %v601_v29 = vpop.f32.mrf.mxu1 }
  0xde   : > { %v863_v14 = vpop.eup %862  ;;  %v628_v16 = vmul.f32 1.442695, %v618_v5  ;;  %v476_v7 = vadd.f32 %v475_v11, %v411_v13  ;;  %v548_v21 = vpop.f32.mrf.mxu0  ;;  %v362_v11 = vadd.f32 %v1083_v26, %v289_v62 }
  0xdf   : > { %v865_v17 = vpop.eup %864  ;;  %v641_v20 = vadd.f32 1.0, %v863_v14 }
  0xe0   : > { %v649_v24 = vmul.f32 %v865_v17, %v640_v4  ;;  %866 = vpow2.f32 %v628_v16  ;;  %v545_v25 = vadd.f32 %v544_v3, %v476_v7  ;;  %vm654_vm1 = vweird.f32 %v865_v17 }
  0xe1   : > { %868 = vrcp.f32 %v641_v20  ;;  %vm655_vm3 = vmor %vm653_vm2, %vm654_vm1  ;;  %v672_v55 = vand.u32 2147483647, %v641_v20  ;;  %v674_v56 = vand.u32 2147483648, %v641_v20  ;;  %vm668_vm7 = vweird.f32 %v641_v20 }
  0xe2   : > { %v650_v32 = vsub.f32 1.0, %v649_v24  ;;  %v598_v34 = vadd.f32 %v597_v6, %v545_v25  ;;  %v481_v35 = vpop.f32.mrf.mxu3 }
  0xe3   : > { %v415_v38 = vpop.f32.mrf.mxu2  ;;  %v675_v3 = vor.u32 1.1754944e-38, %v674_v56  ;;  %vm673_vm9 = vcmp.eq.f32.partialorder %v672_v55, 8.507059e+37 }
  0xe4   : > { %v651_v19 = vmul.f32 %v865_v17, %v650_v32  ;;  %v619_v39 = vsub.f32 0.0, %v598_v34  ;;  %v416_v40 = vadd.f32 %v415_v38, %v354_v28  ;;  %v605_v58 = vpop.f32.mrf.mxu1 }
  0xe6   : > { %v867_v42 = vpop.eup %866  ;;  %v652_v43 = vadd.f32 %v865_v17, %v651_v19  ;;  %v630_v44 = vmul.f32 1.442695, %v619_v39  ;;  %v482_v45 = vadd.f32 %v481_v35, %v416_v40  ;;  %v552_v50 = vpop.f32.mrf.mxu0 }
  0xe7   : > { %v869_v18 = vpop.eup %868  ;;  %v1109_v47 = vadd.f32 1.0, %v867_v42 }
  0xe8   : > { %v656_v48 = vsel %vm655_vm3, %v865_v17, %v652_v43  ;;  %v664_v23 = vmul.f32 %v869_v18, %v641_v20  ;;  %870 = vpow2.f32 %v630_v44  ;;  %v549_v53 = vadd.f32 %v548_v21, %v482_v45 }
  0xe9   : > { %v661_v49 = vsel %vm658_vm5, %v660_v46, %v656_v48  ;;  %872 = vrcp.f32 %v1109_v47  ;;  %vm669_vm6 = vweird.f32 %v869_v18  ;;  %v687_v13 = vand.u32 2147483647, %v1109_v47 }
  0xea   : > { %769 = vst.msk [vmem:[%s1107_s4] sm:$0xff] %vm768_vm4, %v661_v49  ;;  %v665_v52 = vsub.f32 1.0, %v664_v23  ;;  %v487_v54 = vpop.f32.mrf.mxu3  ;;  %v602_v60 = vadd.f32 %v601_v29, %v549_v53  ;;  %vm670_vm8 = vmor %vm668_vm7, %vm669_vm6  ;;  %v689_v14 = vand.u32 2147483648, %v1109_v47  ;;  %v297_v21 = vadd.f32 %v1089_v31, %v1091_v33 }
  0xeb   : > { %v420_v57 = vpop.f32.mrf.mxu2  ;;  %vm683_vm11 = vweird.f32 %v1109_v47  ;;  %vm688_vm13 = vcmp.eq.f32.partialorder %v687_v13, 8.507059e+37 }
  0xec   : > { %v666_v59 = vmul.f32 %v869_v18, %v665_v52  ;;  %v421_v61 = vadd.f32 %v420_v57, %v358_v51  ;;  %v620_v22 = vsub.f32 0.0, %v602_v60  ;;  %v609_v26 = vpop.f32.mrf.mxu1  ;;  %v690_v32 = vor.u32 1.1754944e-38, %v689_v14 }
  0xed   : > { %v366_v31 = vadd.f32 %v1087_v30, %v297_v21 }
  0xee   : > { %v871_v63 = vpop.eup %870  ;;  %v667_v0 = vadd.f32 %v869_v18, %v666_v59  ;;  %v488_v1 = vadd.f32 %v487_v54, %v421_v61  ;;  %v632_v9 = vmul.f32 1.442695, %v620_v22  ;;  %v556_v16 = vpop.f32.mrf.mxu0 }
  0xef   : > { %v873_v2 = vpop.eup %872  ;;  %v643_v4 = vadd.f32 1.0, %v871_v63 }
  0xf0   : > { %v671_v6 = vsel %vm670_vm8, %v869_v18, %v667_v0  ;;  %v679_v8 = vmul.f32 %v873_v2, %v1109_v47  ;;  %v553_v12 = vadd.f32 %v552_v50, %v488_v1  ;;  %vm684_vm10 = vweird.f32 %v873_v2 }
  0xf1   : > { %v676_v10 = vsel %vm673_vm9, %v675_v3, %v671_v6  ;;  %874 = vrcp.f32 %v643_v4  ;;  %vm685_vm12 = vmor %vm683_vm11, %vm684_vm10  ;;  %v702_v40 = vand.u32 2147483647, %v643_v4  ;;  %v704_v41 = vand.u32 2147483648, %v643_v4 }
  0xf2   : > { %770 = vst.msk [vmem:[%s1107_s4 + $0x8] sm:$0xff] %vm768_vm4, %v676_v10  ;;  %v680_v27 = vsub.f32 1.0, %v679_v8  ;;  %876 = vpow2.f32 %v632_v9  ;;  %v493_v5 = vpop.f32.mrf.mxu3  ;;  %v606_v17 = vadd.f32 %v605_v58, %v553_v12  ;;  %vm698_vm15 = vweird.f32 %v643_v4 }
  0xf3   : > { %v425_v15 = vpop.f32.mrf.mxu2  ;;  %v705_v30 = vor.u32 1.1754944e-38, %v704_v41  ;;  %vm703_vm1 = vcmp.eq.f32.partialorder %v702_v40, 8.507059e+37 }
  0xf4   : > { %v681_v7 = vmul.f32 %v873_v2, %v680_v27  ;;  %v426_v20 = vadd.f32 %v425_v15, %v362_v11  ;;  %v621_v25 = vsub.f32 0.0, %v606_v17  ;;  %v613_v49 = vpop.f32.mrf.mxu1 }
  0xf6   : > { %v682_v24 = vadd.f32 %v873_v2, %v681_v7  ;;  %v494_v29 = vadd.f32 %v493_v5, %v426_v20  ;;  %v634_v37 = vmul.f32 1.442695, %v621_v25  ;;  %v560_v46 = vpop.f32.mrf.mxu0 }
  0xf7   : > { %v875_v28 = vpop.eup %874 }
  0xf8   : > { %v877_v34 = vpop.eup %876  ;;  %v686_v35 = vsel %vm685_vm12, %v873_v2, %v682_v24  ;;  %v694_v36 = vmul.f32 %v875_v28, %v643_v4  ;;  %v557_v39 = vadd.f32 %v556_v16, %v494_v29  ;;  %878 = vpow2.f32 %v634_v37 }
  0xf9   : > { %v691_v38 = vsel %vm688_vm13, %v690_v32, %v686_v35  ;;  %v644_v19 = vadd.f32 1.0, %v877_v34  ;;  %vm699_vm14 = vweird.f32 %v875_v28 }
  0xfa   : > { %771 = vst.msk [vmem:[%s1107_s4 + $0x10] sm:$0xff] %vm768_vm4, %v691_v38  ;;  %v695_v33 = vsub.f32 1.0, %v694_v36  ;;  %v499_v43 = vpop.f32.mrf.mxu3  ;;  %v610_v45 = vadd.f32 %v609_v26, %v557_v39  ;;  %vm700_vm0 = vmor %vm698_vm15, %vm699_vm14 }
  0xfb   : > { %880 = vrcp.f32 %v644_v19  ;;  %v430_v42 = vpop.f32.mrf.mxu2  ;;  %v719_v61 = vand.u32 2147483648, %v644_v19  ;;  %v717_v63 = vand.u32 2147483647, %v644_v19  ;;  %vm713_vm3 = vweird.f32 %v644_v19 }
  0xfc   : > { %v696_v44 = vmul.f32 %v875_v28, %v695_v33  ;;  %v431_v18 = vadd.f32 %v430_v42, %v366_v31  ;;  %v622_v48 = vsub.f32 0.0, %v610_v45 }
  0xfd   : > { %v720_v3 = vor.u32 1.1754944e-38, %v719_v61  ;;  %vm718_vm6 = vcmp.eq.f32.partialorder %v717_v63, 8.507059e+37 }
  0xfe   : > { %v697_v47 = vadd.f32 %v875_v28, %v696_v44  ;;  %v500_v23 = vadd.f32 %v499_v43, %v431_v18  ;;  %v879_v50 = vpop.eup %878  ;;  %v636_v52 = vmul.f32 1.442695, %v622_v48 }
  0xff   : > { %v645_v56 = vadd.f32 1.0, %v879_v50 }
 0x100   : > { %v701_v51 = vsel %vm700_vm0, %v875_v28, %v697_v47  ;;  %v561_v53 = vadd.f32 %v560_v46, %v500_v23  ;;  %882 = vpow2.f32 %v636_v52 }
 0x101   : > { %v881_v54 = vpop.eup %880  ;;  %v706_v55 = vsel %vm703_vm1, %v705_v30, %v701_v51  ;;  %884 = vrcp.f32 %v645_v56  ;;  %v734_v11 = vand.u32 2147483648, %v645_v56  ;;  %v732_v5 = vand.u32 2147483647, %v645_v56 }
 0x102   : > { %772 = vst.msk [vmem:[%s1107_s4 + $0x18] sm:$0xff] %vm768_vm4, %v706_v55  ;;  %v709_v57 = vmul.f32 %v881_v54, %v644_v19  ;;  %v614_v58 = vadd.f32 %v613_v49, %v561_v53  ;;  %vm714_vm2 = vweird.f32 %v881_v54  ;;  %vm728_vm8 = vweird.f32 %v645_v56 }
 0x103   : > { %vm715_vm5 = vmor %vm713_vm3, %vm714_vm2  ;;  %v735_v16 = vor.u32 1.1754944e-38, %v734_v11  ;;  %vm733_vm10 = vcmp.eq.f32.partialorder %v732_v5, 8.507059e+37 }
 0x104   : > { %v710_v59 = vsub.f32 1.0, %v709_v57  ;;  %v623_v60 = vsub.f32 0.0, %v614_v58 }
 0x106   : > { %v711_v62 = vmul.f32 %v881_v54, %v710_v59  ;;  %v638_v0 = vmul.f32 1.442695, %v623_v60  ;;  %v883_v22 = vpop.eup %882 }
 0x107   : > { %v885_v2 = vpop.eup %884  ;;  %v646_v4 = vadd.f32 1.0, %v883_v22 }
 0x108   : > { %v712_v1 = vadd.f32 %v881_v54, %v711_v62  ;;  %886 = vpow2.f32 %v638_v0  ;;  %v724_v8 = vmul.f32 %v885_v2, %v645_v56  ;;  %vm729_vm7 = vweird.f32 %v885_v2 }
 0x109   : > { %888 = vrcp.f32 %v646_v4  ;;  %vm730_vm9 = vmor %vm728_vm8, %vm729_vm7  ;;  %v749_v26 = vand.u32 2147483648, %v646_v4  ;;  %v747_v25 = vand.u32 2147483647, %v646_v4  ;;  %vm743_vm12 = vweird.f32 %v646_v4 }
 0x10a   : > { %v716_v6 = vsel %vm715_vm5, %v881_v54, %v712_v1  ;;  %v725_v10 = vsub.f32 1.0, %v724_v8 }
 0x10b   : > { %v721_v9 = vsel %vm718_vm6, %v720_v3, %v716_v6  ;;  %v750_v34 = vor.u32 1.1754944e-38, %v749_v26  ;;  %vm748_vm14 = vcmp.eq.f32.partialorder %v747_v25, 8.507059e+37 }
 0x10c   : > { %773 = vst.msk [vmem:[%s1107_s4 + $0x20] sm:$0xff] %vm768_vm4, %v721_v9  ;;  %v726_v12 = vmul.f32 %v885_v2, %v725_v10 }
 0x10e   : > { %v887_v27 = vpop.eup %886  ;;  %v727_v14 = vadd.f32 %v885_v2, %v726_v12 }
 0x10f   : > { %v647_v13 = vadd.f32 1.0, %v887_v27  ;;  %v889_v15 = vpop.eup %888 }
 0x110   : > { %v731_v7 = vsel %vm730_vm9, %v885_v2, %v727_v14  ;;  %v739_v17 = vmul.f32 %v889_v15, %v646_v4  ;;  %vm744_vm11 = vweird.f32 %v889_v15 }
 0x111   : > { %890 = vrcp.f32 %v647_v13  ;;  %v736_v20 = vsel %vm733_vm10, %v735_v16, %v731_v7  ;;  %vm745_vm13 = vmor %vm743_vm12, %vm744_vm11  ;;  %v764_v38 = vand.u32 2147483648, %v647_v13  ;;  %v762_v39 = vand.u32 2147483647, %v647_v13 }
 0x112   : > { %774 = vst.msk [vmem:[%s1107_s4 + $0x28] sm:$0xff] %vm768_vm4, %v736_v20  ;;  %v740_v21 = vsub.f32 1.0, %v739_v17  ;;  %vm758_vm0 = vweird.f32 %v647_v13 }
 0x113   : > { %v765_v33 = vor.u32 1.1754944e-38, %v764_v38  ;;  %vm763_vm2 = vcmp.eq.f32.partialorder %v762_v39, 8.507059e+37 }
 0x114   : > { %v741_v24 = vmul.f32 %v889_v15, %v740_v21 }
 0x116   : > { %v742_v28 = vadd.f32 %v889_v15, %v741_v24 }
 0x117   : > { %v891_v29 = vpop.eup %890 }
 0x118   : > { %v754_v32 = vmul.f32 %v891_v29, %v647_v13  ;;  %v746_v35 = vsel %vm745_vm13, %v889_v15, %v742_v28  ;;  %vm759_vm15 = vweird.f32 %v891_v29 }
 0x119   : > { %v751_v37 = vsel %vm748_vm14, %v750_v34, %v746_v35  ;;  %vm760_vm1 = vmor %vm758_vm0, %vm759_vm15 }
 0x11a   : > { %v755_v36 = vsub.f32 1.0, %v754_v32  ;;  %775 = vst.msk [vmem:[%s1107_s4 + $0x30] sm:$0xff] %vm768_vm4, %v751_v37 }
 0x11c   : > { %v756_v19 = vmul.f32 %v891_v29, %v755_v36 }
 0x11e   : > { %v757_v31 = vadd.f32 %v891_v29, %v756_v19 }
 0x120   : > { %v761_v40 = vsel %vm760_vm1, %v891_v29, %v757_v31 }
 0x121   : > { %v766_v41 = vsel %vm763_vm2, %v765_v33, %v761_v40 }
 0x122   : > { %776 = vst.msk [vmem:[%s1107_s4 + $0x38] sm:$0xff] %vm768_vm4, %v766_v41 }
 0x123 PF: > { %s14_s14 = sadd.s32 1, %s898_s14  }
 0x124   : > { %p11_p4 = scmp.ge.s32.totalorder %s14_s14, 4  }
 0x126   :  { %13 = sbr.rel (!%p11_p4) target bundleno = 2 (0x2), region = 62 }

</bundles_post_ra>
